<compile_context>
chip_gen: v5e
topology: v5e:2x2
jax: 0.10.0
libtpu: 0.0.40
codegen_flags: <defaults>
</compile_context>

<pallas_src>
import numpy as np

import jax
import jax.numpy as jnp
from jax.experimental import pallas as pl
from jax.experimental.pallas import tpu as pltpu

A_COEF = 0.1        # DistanceLayer.a
BETA = 1.0e6        # DistanceLayer.beta
EPS = 1e-8
PAD_DIST = 1.0e30   # sentinel "distance" for padded prototype lanes
                    # (keeps -d*BETA finite in f32; do not raise further)


def _ceil_to(a, m):
    return ((a + m - 1) // m) * m


def protorynet_kernel(x_ref, pt_ref, psq_ref, dist_ref, hot_ref):
    """Fused PrototypeLayer + DistanceLayer for one tile of sentence vectors.

    x_ref:    (tm, V)   sentence vectors (f32 or bf16)
    pt_ref:   (V, Kp)   prototypes, transposed, K padded to 128
    psq_ref:  (1, Kp)   f32 ||prototype||^2  (PAD_DIST in padded lanes)
    dist_ref: (tm, Kp)  squared distances    (PrototypeLayer output)
    hot_ref:  (tm, Kp)  dist_hot_vect        (DistanceLayer output)
    """
    x = x_ref[...]                                               # (tm, V)
    pt = pt_ref[...]                                             # (V, Kp)
    psq = psq_ref[...]                                           # (1, Kp)

    # PrototypeLayer via ||x||^2 + ||p||^2 - 2 x.p  (cross term on the MXU).
    xf = x.astype(jnp.float32)
    xsq = jnp.sum(xf * xf, axis=-1, keepdims=True)               # (tm, 1) lane reduce
    cross = jnp.dot(x, pt, preferred_element_type=jnp.float32)   # (tm, Kp) MXU
    d = jnp.maximum(xsq + psq - 2.0 * cross, 0.0)                # clamp cancellation
    dist_ref[...] = d.astype(dist_ref.dtype)

    # DistanceLayer: softmax(-d * beta) over prototypes, times exp(-a*d)+eps.
    # Padded lanes: d ~ 1e30 -> logits ~ -1e36 -> exp underflows to 0, so they
    # contribute nothing to the softmax normalization and get weight exactly 0.
    z = -d * BETA
    z = z - jnp.max(z, axis=-1, keepdims=True)                   # stable softmax
    ez = jnp.exp(z)
    inv_denom = pl.reciprocal(jnp.sum(ez, axis=-1, keepdims=True), approx=True)
    e_dist = jnp.exp(-(A_COEF * d)) + EPS
    hot_ref[...] = (ez * inv_denom * e_dist).astype(hot_ref.dtype)
    # NOTE(v7x micro-opt, not applied): beta=1e6 softmax could be replaced by an
    # explicit argmin mask (drops one exp + the reciprocal) but changes the
    # forward semantics for exact/near ties, so the exact softmax is kept.


def _default_tile_m():
    # 2048 on v5-class chips (lower HBM BW / smaller default scoped VMEM),
    # 4096 on v6e / v7x.
    try:
        kind = jax.devices()[0].device_kind.lower()
    except Exception:
        kind = ""
    return 2048 if "v5" in kind else 4096


def _build_call(*, n_rows, V, k_pad, tm, x_dtype, out_dtype, single_buffer_protos):
    x_bytes = np.dtype(x_dtype).itemsize
    out_bytes = np.dtype(out_dtype).itemsize
    grid = (pl.cdiv(n_rows, tm),)

    # Prototype blocks have a constant index_map (never re-fetched); ask for a
    # single buffer to free VMEM headroom for the big row tile.
    proto_mode = pl.Buffered(1) if single_buffer_protos else None

    cost = pl.CostEstimate(
        flops=2 * n_rows * V * k_pad,
        transcendentals=2 * n_rows * k_pad,
        bytes_accessed=(n_rows * V * x_bytes
                        + 2 * n_rows * k_pad * out_bytes
                        + V * k_pad * x_bytes + k_pad * 4),
    )

    # VMEM footprint: double-buffered x tile + two double-buffered outputs +
    # prototype buffers (count 2 conservatively) + 25% margin.
    need = (2 * tm * V * x_bytes
            + 2 * 2 * tm * k_pad * out_bytes
            + 2 * (V * k_pad * x_bytes + k_pad * 4))
    vmem_limit = int(min(max(int(need * 1.25) + (1 << 20), 32 << 20), 64 << 20))

    return pl.pallas_call(
        protorynet_kernel,
        out_shape=(
            jax.ShapeDtypeStruct((n_rows, k_pad), out_dtype),
            jax.ShapeDtypeStruct((n_rows, k_pad), out_dtype),
        ),
        grid_spec=pltpu.PrefetchScalarGridSpec(
            num_scalar_prefetch=0,
            grid=grid,
            in_specs=[
                pl.BlockSpec((tm, V), lambda i: (i, 0)),                 # sentence rows
                pl.BlockSpec((V, k_pad), lambda i: (0, 0),
                             pipeline_mode=proto_mode),                  # prototypes^T, resident
                pl.BlockSpec((1, k_pad), lambda i: (0, 0),
                             pipeline_mode=proto_mode),                  # ||p||^2, resident
            ],
            out_specs=[
                pl.BlockSpec((tm, k_pad), lambda i: (i, 0)),
                pl.BlockSpec((tm, k_pad), lambda i: (i, 0)),
            ],
        ),
        compiler_params=pltpu.CompilerParams(
            dimension_semantics=("parallel",),
            vmem_limit_bytes=vmem_limit,
        ),
        cost_estimate=cost,
    )


def protorynet_forward(x, prototypes, *, tile_m=None, out_dtype=jnp.float32,
                       x_compute_dtype=None, compact=False):
    """x: (B, S, V); prototypes: (K, V).

    Returns (distances, dist_hot_vect, prototypes).

    By default distances / dist_hot_vect are returned lane-padded as
    (B, S, k_pad=128) with only the first K lanes meaningful (padded lanes:
    huge distance / exactly-zero weight) so no extra HBM compaction copy is
    made; pass compact=True to get exactly (B, S, K).

    out_dtype=jnp.bfloat16 / x_compute_dtype=jnp.bfloat16 trim HBM bytes
    further but change rounding (beta=1e6 softmax is argmin-sensitive), so
    both default to float32 to match the PyTorch forward.
    """
    B, S, V = x.shape
    K = prototypes.shape[0]
    N = B * S

    if tile_m is None:
        tile_m = _default_tile_m()

    # Row tile: big to amortize the ~0.35us grid-step overhead, clamped for
    # small inputs, and shrunk so the 1-D parallel grid has >= 4 steps when N
    # allows it (so v7x's two TensorCores split it and the pipeline overlaps).
    tm = _ceil_to(min(tile_m, _ceil_to(N, 8)), 8)
    if pl.cdiv(N, tm) < 4 and N >= 4 * 8:
        tm = _ceil_to(pl.cdiv(N, 4), 8)

    x_dtype = np.dtype(x_compute_dtype) if x_compute_dtype is not None else np.dtype(jnp.float32)
    out_dtype = np.dtype(out_dtype)
    k_pad = max(_ceil_to(K, 128), 128)   # lane-dense output; do NOT widen to 256

    # No row padding: cdiv grid + masked partial final block handles N % tm.
    x2 = x.reshape(N, V).astype(x_dtype)

    protos = prototypes.astype(jnp.float32)                      # (K, V)
    p_t = jnp.zeros((V, k_pad), x_dtype).at[:, :K].set(protos.T.astype(x_dtype))
    p_sq = (jnp.full((1, k_pad), PAD_DIST, jnp.float32)
            .at[:, :K].set(jnp.sum(protos * protos, axis=-1)[None, :]))

    kwargs = dict(n_rows=N, V=V, k_pad=k_pad, tm=tm,
                  x_dtype=x_dtype, out_dtype=out_dtype)
    try:
        dist, hot = _build_call(single_buffer_protos=True, **kwargs)(x2, p_t, p_sq)
    except Exception:
        # pipeline_mode=pl.Buffered(1) not supported on this jax version / config:
        # fall back to default double-buffering (correctness identical).
        dist, hot = _build_call(single_buffer_protos=False, **kwargs)(x2, p_t, p_sq)

    # Reshape is metadata-only (row count unchanged, no pad rows).
    dist = dist.reshape(B, S, k_pad)
    hot = hot.reshape(B, S, k_pad)
    if compact:
        dist = dist[..., :K]
        hot = hot[..., :K]
    return dist, hot, protos


def reference_forward(x, prototypes):
    """Pure-JAX reference mirroring the PyTorch module exactly."""
    diff = x[:, :, None, :] - prototypes[None, None, :, :]
    d = jnp.sum(diff * diff, axis=-1)
    sm = jax.nn.softmax(-d * BETA, axis=-1)
    e_dist = jnp.exp(-(A_COEF * d)) + EPS
    return d, sm * e_dist


if __name__ == "__main__":
    # Small shapes consistent with the module (vect_size scaled down from 512).
    B, S = 2, 8            # batch of reviews, sentences per review
    VECT_SIZE = 128        # sentence-embedding size
    K_PROTOS = 10          # number of prototypes (module default)
    K_CENTS = 0.5          # nn.init.constant_(self.prototypes, k_cents)

    key = jax.random.PRNGKey(0)
    # Scale inputs so distances are moderate and dist_hot_vect is not ~1e-70.
    x = 0.1 * jax.random.normal(key, (B, S, VECT_SIZE), dtype=jnp.float32)
    # Deterministic parameter init matching nn.init.constant_(prototypes, k_cents).
    prototypes = jnp.full((K_PROTOS, VECT_SIZE), K_CENTS, dtype=jnp.float32)

    dist_pad, hot_pad, protos = protorynet_forward(x, prototypes)
    jax.block_until_ready((dist_pad, hot_pad, protos))

    # Default layout: lane-padded to 128 prototypes, only the first K are valid.
    assert dist_pad.shape == (B, S, 128) and hot_pad.shape == (B, S, 128)
    dist = dist_pad[..., :K_PROTOS]
    hot = hot_pad[..., :K_PROTOS]

    dist_ref, hot_ref = reference_forward(x, prototypes)
    # matmul-form distances differ from the broadcast form only by fp32
    # cancellation noise; the approx reciprocal adds a small relative error.
    assert jnp.allclose(dist, dist_ref, rtol=1e-4, atol=1e-2)
    assert jnp.allclose(hot, hot_ref, rtol=2e-2, atol=1e-6)
    # Padded prototype lanes must carry (essentially) zero weight.
    assert float(jnp.max(hot_pad[..., K_PROTOS:])) <= 1e-20

    # TODO(synk): the LSTM + Linear/Sigmoid head in createModel is dead/broken
    # code in the reference (invalid nn.LSTM call); only the Prototype/Distance
    # layers constitute the runnable forward pass and are implemented here.
    print("KERNEL_OK")
</pallas_src>

<mosaic_0001>
module attributes {stable_mosaic.version = 11 : i64} {
  func.func @protorynet_kernel(%arg0: i32, %arg1: memref<16x128xf32, #tpu.memory_space<vmem>>, %arg2: memref<128x128xf32, #tpu.memory_space<vmem>>, %arg3: memref<1x128xf32, #tpu.memory_space<vmem>>, %arg4: memref<16x128xf32, #tpu.memory_space<vmem>>, %arg5: memref<16x128xf32, #tpu.memory_space<vmem>>) attributes {dimension_semantics = [#tpu.dimension_semantics<parallel>], iteration_bounds = array<i64: 1>, scalar_prefetch = 0 : i64, scratch_operands = 0 : i64, tpu.core_type = #tpu.core_type<tc>, window_params = [{transform_indices = @transform_0, window_bounds = array<i64: 16, 128>}, {pipeline_mode = #tpu.pipeline_mode<synchronous>, transform_indices = @transform_1, window_bounds = array<i64: 128, 128>}, {pipeline_mode = #tpu.pipeline_mode<synchronous>, transform_indices = @transform_2, window_bounds = array<i64: 1, 128>}, {transform_indices = @transform_3, window_bounds = array<i64: 16, 128>}, {transform_indices = @transform_4, window_bounds = array<i64: 16, 128>}]} {
    %c0 = arith.constant 0 : index
    %c0_0 = arith.constant 0 : index
    %0 = vector.load %arg1[%c0, %c0_0] : memref<16x128xf32, #tpu.memory_space<vmem>>, vector<16x128xf32>
    %c0_1 = arith.constant 0 : index
    %c0_2 = arith.constant 0 : index
    %1 = vector.load %arg2[%c0_1, %c0_2] : memref<128x128xf32, #tpu.memory_space<vmem>>, vector<128x128xf32>
    %c0_3 = arith.constant 0 : index
    %c0_4 = arith.constant 0 : index
    %2 = vector.load %arg3[%c0_3, %c0_4] : memref<1x128xf32, #tpu.memory_space<vmem>>, vector<1x128xf32>
    %3 = arith.mulf %0, %0 : vector<16x128xf32>
    %cst = arith.constant dense<0.000000e+00> : vector<16xf32>
    %4 = vector.multi_reduction <add>, %3, %cst [1] : vector<16x128xf32> to vector<16xf32>
    %5 = vector.shape_cast %4 : vector<16xf32> to vector<16x1xf32>
    %cst_5 = arith.constant dense<0.000000e+00> : vector<16x128xf32>
    %6 = tpu.matmul %0, %1, %cst_5 {dimension_numbers = #tpu.dot_dimension_numbers<[1], [0], [0], [1], [0, 0, 1, 1], [], []>} : vector<16x128xf32>, vector<128x128xf32>, vector<16x128xf32> -> vector<16x128xf32>
    %7 = vector.broadcast %5 : vector<16x1xf32> to vector<16x128xf32>
    %8 = vector.broadcast %2 : vector<1x128xf32> to vector<16x128xf32>
    %9 = arith.addf %7, %8 : vector<16x128xf32>
    %cst_6 = arith.constant 2.000000e+00 : f32
    %10 = vector.broadcast %cst_6 : f32 to vector<16x128xf32>
    %11 = arith.mulf %10, %6 : vector<16x128xf32>
    %12 = arith.subf %9, %11 : vector<16x128xf32>
    %cst_7 = arith.constant 0.000000e+00 : f32
    %13 = vector.broadcast %cst_7 : f32 to vector<16x128xf32>
    %14 = arith.maximumf %12, %13 : vector<16x128xf32>
    %c0_8 = arith.constant 0 : index
    %c0_9 = arith.constant 0 : index
    %15 = vector.load %arg4[%c0_8, %c0_9] : memref<16x128xf32, #tpu.memory_space<vmem>>, vector<16x128xf32>
    tpu.vector_store %arg4[%c0_8, %c0_9], %14 {strides = array<i32>} : memref<16x128xf32, #tpu.memory_space<vmem>>, vector<16x128xf32>,
    %cst_10 = arith.constant 0.000000e+00 : f32
    %16 = vector.broadcast %cst_10 : f32 to vector<16x128xf32>
    %17 = arith.subf %16, %14 : vector<16x128xf32>
    %cst_11 = arith.constant 1.000000e+06 : f32
    %18 = vector.broadcast %cst_11 : f32 to vector<16x128xf32>
    %19 = arith.mulf %17, %18 : vector<16x128xf32>
    %cst_12 = arith.constant dense<0xFF800000> : vector<16xf32>
    %20 = vector.multi_reduction <maximumf>, %19, %cst_12 [1] : vector<16x128xf32> to vector<16xf32>
    %21 = vector.shape_cast %20 : vector<16xf32> to vector<16x1xf32>
    %22 = vector.broadcast %21 : vector<16x1xf32> to vector<16x128xf32>
    %23 = arith.subf %19, %22 : vector<16x128xf32>
    %24 = math.exp %23 : vector<16x128xf32>
    %cst_13 = arith.constant dense<0.000000e+00> : vector<16xf32>
    %25 = vector.multi_reduction <add>, %24, %cst_13 [1] : vector<16x128xf32> to vector<16xf32>
    %26 = vector.shape_cast %25 : vector<16xf32> to vector<16x1xf32>
    %27 = tpu.reciprocal %26 {approx = true} : vector<16x1xf32> -> vector<16x1xf32>
    %cst_14 = arith.constant 1.000000e-01 : f32
    %28 = vector.broadcast %cst_14 : f32 to vector<16x128xf32>
    %29 = arith.mulf %28, %14 : vector<16x128xf32>
    %cst_15 = arith.constant 0.000000e+00 : f32
    %30 = vector.broadcast %cst_15 : f32 to vector<16x128xf32>
    %31 = arith.subf %30, %29 : vector<16x128xf32>
    %32 = math.exp %31 : vector<16x128xf32>
    %cst_16 = arith.constant 9.99999993E-9 : f32
    %33 = vector.broadcast %cst_16 : f32 to vector<16x128xf32>
    %34 = arith.addf %32, %33 : vector<16x128xf32>
    %35 = vector.broadcast %27 : vector<16x1xf32> to vector<16x128xf32>
    %36 = arith.mulf %24, %35 : vector<16x128xf32>
    %37 = arith.mulf %36, %34 : vector<16x128xf32>
    %c0_17 = arith.constant 0 : index
    %c0_18 = arith.constant 0 : index
    %38 = vector.load %arg5[%c0_17, %c0_18] : memref<16x128xf32, #tpu.memory_space<vmem>>, vector<16x128xf32>
    tpu.vector_store %arg5[%c0_17, %c0_18], %37 {strides = array<i32>} : memref<16x128xf32, #tpu.memory_space<vmem>>, vector<16x128xf32>,
    return
  }
  func.func @transform_0(%arg0: i32) -> (i32, i32) {
    %c0_i32 = arith.constant 0 : i32
    %c0_i32_0 = arith.constant 0 : i32
    return %arg0, %c0_i32 : i32, i32
  }
  func.func @transform_1(%arg0: i32) -> (i32, i32) {
    %c0_i32 = arith.constant 0 : i32
    %c0_i32_0 = arith.constant 0 : i32
    %c0_i32_1 = arith.constant 0 : i32
    return %c0_i32, %c0_i32_0 : i32, i32
  }
  func.func @transform_2(%arg0: i32) -> (i32, i32) {
    %c0_i32 = arith.constant 0 : i32
    %c0_i32_0 = arith.constant 0 : i32
    %c0_i32_1 = arith.constant 0 : i32
    return %c0_i32, %c0_i32_0 : i32, i32
  }
  func.func @transform_3(%arg0: i32) -> (i32, i32) {
    %c0_i32 = arith.constant 0 : i32
    %c0_i32_0 = arith.constant 0 : i32
    return %arg0, %c0_i32 : i32, i32
  }
  func.func @transform_4(%arg0: i32) -> (i32, i32) {
    %c0_i32 = arith.constant 0 : i32
    %c0_i32_0 = arith.constant 0 : i32
    return %arg0, %c0_i32 : i32, i32
  }
}

module attributes {stable_mosaic.version = 11 : i64} {
  func.func @protorynet_kernel(%arg0: i32, %arg1: memref<16x128xf32, #tpu.memory_space<vmem>>, %arg2: memref<128x128xf32, #tpu.memory_space<vmem>>, %arg3: memref<1x128xf32, #tpu.memory_space<vmem>>, %arg4: memref<16x128xf32, #tpu.memory_space<vmem>>, %arg5: memref<16x128xf32, #tpu.memory_space<vmem>>) attributes {dimension_semantics = [#tpu.dimension_semantics<parallel>], iteration_bounds = array<i64: 1>, scalar_prefetch = 0 : i64, scratch_operands = 0 : i64, tpu.core_type = #tpu.core_type<tc>, window_params = [{transform_indices = @transform_0, window_bounds = array<i64: 16, 128>}, {pipeline_mode = #tpu.pipeline_mode<synchronous>, transform_indices = @transform_1, window_bounds = array<i64: 128, 128>}, {pipeline_mode = #tpu.pipeline_mode<synchronous>, transform_indices = @transform_2, window_bounds = array<i64: 1, 128>}, {transform_indices = @transform_3, window_bounds = array<i64: 16, 128>}, {transform_indices = @transform_4, window_bounds = array<i64: 16, 128>}]} {
    %c0 = arith.constant 0 : index
    %c0_0 = arith.constant 0 : index
    %0 = vector.load %arg1[%c0, %c0_0] : memref<16x128xf32, #tpu.memory_space<vmem>>, vector<16x128xf32>
    %c0_1 = arith.constant 0 : index
    %c0_2 = arith.constant 0 : index
    %1 = vector.load %arg2[%c0_1, %c0_2] : memref<128x128xf32, #tpu.memory_space<vmem>>, vector<128x128xf32>
    %c0_3 = arith.constant 0 : index
    %c0_4 = arith.constant 0 : index
    %2 = vector.load %arg3[%c0_3, %c0_4] : memref<1x128xf32, #tpu.memory_space<vmem>>, vector<1x128xf32>
    %3 = arith.mulf %0, %0 : vector<16x128xf32>
    %cst = arith.constant dense<0.000000e+00> : vector<16xf32>
    %4 = vector.multi_reduction <add>, %3, %cst [1] : vector<16x128xf32> to vector<16xf32>
    %5 = vector.shape_cast %4 : vector<16xf32> to vector<16x1xf32>
    %cst_5 = arith.constant dense<0.000000e+00> : vector<16x128xf32>
    %6 = tpu.matmul %0, %1, %cst_5 {dimension_numbers = #tpu.dot_dimension_numbers<[1], [0], [0], [1], [0, 0, 1, 1], [], []>} : vector<16x128xf32>, vector<128x128xf32>, vector<16x128xf32> -> vector<16x128xf32>
    %7 = vector.broadcast %5 : vector<16x1xf32> to vector<16x128xf32>
    %8 = vector.broadcast %2 : vector<1x128xf32> to vector<16x128xf32>
    %9 = arith.addf %7, %8 : vector<16x128xf32>
    %cst_6 = arith.constant 2.000000e+00 : f32
    %10 = vector.broadcast %cst_6 : f32 to vector<16x128xf32>
    %11 = arith.mulf %10, %6 : vector<16x128xf32>
    %12 = arith.subf %9, %11 : vector<16x128xf32>
    %cst_7 = arith.constant 0.000000e+00 : f32
    %13 = vector.broadcast %cst_7 : f32 to vector<16x128xf32>
    %14 = arith.maximumf %12, %13 : vector<16x128xf32>
    %c0_8 = arith.constant 0 : index
    %c0_9 = arith.constant 0 : index
    %15 = vector.load %arg4[%c0_8, %c0_9] : memref<16x128xf32, #tpu.memory_space<vmem>>, vector<16x128xf32>
    tpu.vector_store %arg4[%c0_8, %c0_9], %14 {strides = array<i32>} : memref<16x128xf32, #tpu.memory_space<vmem>>, vector<16x128xf32>,
    %cst_10 = arith.constant 0.000000e+00 : f32
    %16 = vector.broadcast %cst_10 : f32 to vector<16x128xf32>
    %17 = arith.subf %16, %14 : vector<16x128xf32>
    %cst_11 = arith.constant 1.000000e+06 : f32
    %18 = vector.broadcast %cst_11 : f32 to vector<16x128xf32>
    %19 = arith.mulf %17, %18 : vector<16x128xf32>
    %cst_12 = arith.constant dense<0xFF800000> : vector<16xf32>
    %20 = vector.multi_reduction <maximumf>, %19, %cst_12 [1] : vector<16x128xf32> to vector<16xf32>
    %21 = vector.shape_cast %20 : vector<16xf32> to vector<16x1xf32>
    %22 = vector.broadcast %21 : vector<16x1xf32> to vector<16x128xf32>
    %23 = arith.subf %19, %22 : vector<16x128xf32>
    %24 = math.exp %23 : vector<16x128xf32>
    %cst_13 = arith.constant dense<0.000000e+00> : vector<16xf32>
    %25 = vector.multi_reduction <add>, %24, %cst_13 [1] : vector<16x128xf32> to vector<16xf32>
    %26 = vector.shape_cast %25 : vector<16xf32> to vector<16x1xf32>
    %27 = tpu.reciprocal %26 {approx = true} : vector<16x1xf32> -> vector<16x1xf32>
    %cst_14 = arith.constant 1.000000e-01 : f32
    %28 = vector.broadcast %cst_14 : f32 to vector<16x128xf32>
    %29 = arith.mulf %28, %14 : vector<16x128xf32>
    %cst_15 = arith.constant 0.000000e+00 : f32
    %30 = vector.broadcast %cst_15 : f32 to vector<16x128xf32>
    %31 = arith.subf %30, %29 : vector<16x128xf32>
    %32 = math.exp %31 : vector<16x128xf32>
    %cst_16 = arith.constant 9.99999993E-9 : f32
    %33 = vector.broadcast %cst_16 : f32 to vector<16x128xf32>
    %34 = arith.addf %32, %33 : vector<16x128xf32>
    %35 = vector.broadcast %27 : vector<16x1xf32> to vector<16x128xf32>
    %36 = arith.mulf %24, %35 : vector<16x128xf32>
    %37 = arith.mulf %36, %34 : vector<16x128xf32>
    %c0_17 = arith.constant 0 : index
    %c0_18 = arith.constant 0 : index
    %38 = vector.load %arg5[%c0_17, %c0_18] : memref<16x128xf32, #tpu.memory_space<vmem>>, vector<16x128xf32>
    tpu.vector_store %arg5[%c0_17, %c0_18], %37 {strides = array<i32>} : memref<16x128xf32, #tpu.memory_space<vmem>>, vector<16x128xf32>,
    return
  }
  func.func @transform_0(%arg0: i32) -> (i32, i32) {
    %c0_i32 = arith.constant 0 : i32
    %c0_i32_0 = arith.constant 0 : i32
    return %arg0, %c0_i32 : i32, i32
  }
  func.func @transform_1(%arg0: i32) -> (i32, i32) {
    %c0_i32 = arith.constant 0 : i32
    %c0_i32_0 = arith.constant 0 : i32
    %c0_i32_1 = arith.constant 0 : i32
    return %c0_i32, %c0_i32_0 : i32, i32
  }
  func.func @transform_2(%arg0: i32) -> (i32, i32) {
    %c0_i32 = arith.constant 0 : i32
    %c0_i32_0 = arith.constant 0 : i32
    %c0_i32_1 = arith.constant 0 : i32
    return %c0_i32, %c0_i32_0 : i32, i32
  }
  func.func @transform_3(%arg0: i32) -> (i32, i32) {
    %c0_i32 = arith.constant 0 : i32
    %c0_i32_0 = arith.constant 0 : i32
    return %arg0, %c0_i32 : i32, i32
  }
  func.func @transform_4(%arg0: i32) -> (i32, i32) {
    %c0_i32 = arith.constant 0 : i32
    %c0_i32_0 = arith.constant 0 : i32
    return %arg0, %c0_i32 : i32, i32
  }
}

</mosaic_0001>

<bundles_post_ra>
// kernel: tpu_custom_call.1
= control target key start
LH: loop header
LB: loop body
LE: loop exit
PB: predicated region body
PF: predicated region fallthrough
CT: control target
= control target key end

     0   :  { %10 = vsyncpa [#allocation3], 0  ;;  %s382_s0 = inlined_call_operand.hbm [shape: f32[16,128], index: 0, kind: input, shape index: {}]   ;;  %s383_s1 = inlined_call_operand.hbm [shape: f32[128,128], index: 1, kind: input, shape index: {}]   ;;  %s384_s2 = inlined_call_operand.vmem [shape: f32[1,128], index: 2, kind: input, shape index: {}]   ;;  %s385_s3 = inlined_call_operand.hbm [shape: f32[16,128], index: 3, kind: output, shape index: {0}]   ;;  %s386_s4 = inlined_call_operand.hbm [shape: f32[16,128], index: 4, kind: output, shape index: {1}]  }
   0x1   :  { %11 = vsyncpa [#allocation6], 0 }
   0x2   :  { %12 = vsyncpa [#allocation4], 0 }
   0x3   :  { %13 = vsyncpa [#allocation9], 0  ;;  %s18_s17 = sshll.u32 %s382_s0, 4  ;;  %s324_s18 = smov [#allocation2]   ;;  %s19_s17 = int_to_ptr.hbm [resolvable:$true] %s18_s17 }
   0x4   :  { %s20_s19 = sshll.u32 %s324_s18, 4  ;;  %s31_s22 = sshll.u32 %s383_s1, 4  ;;  %s21_s19 = int_to_ptr.vmem [resolvable:$true] %s20_s19  ;;  %s32_s22 = int_to_ptr.hbm [resolvable:$true] %s31_s22 }
   0x5   :  { %s325_s23 = smov 128   ;;  %s326_s24 = smov 8  }
   0x6   :  { %26 = dma.hbm_to_vmem [thread:$0]  %s19_s17, 256, %s21_s19, [#allocation3], %s325_s23, %s325_s23, %s326_s24  }
   0x7   :  { %s327_s25 = smov [#allocation5]  }
   0x8   :  { %s33_s26 = sshll.u32 %s327_s25, 4  ;;  %s34_s26 = int_to_ptr.vmem [resolvable:$true] %s33_s26 }
   0x9   :  { %39 = dma.hbm_to_vmem [thread:$0]  %s32_s22, 2048, %s34_s26, [#allocation6], %s325_s23, %s325_s23, %s326_s24  }
   0xa   :  { %316 = dma.done.wait [#allocation3], 256  }
   0xb   :  { %317 = vsyncadd [#allocation3], 4294967040 }
   0xc   :  { %318 = dma.done.wait [#allocation6], 2048  }
   0xd   :  { %319 = vsyncadd [#allocation6], 4294965248  ;;  %v67_v0 = vld [vmem:[#allocation5 + $0x78] sm:$0xff]  ;;  %v66_v1 = vld [vmem:[#allocation5 + $0x70] sm:$0xff]  ;;  %s153_s28 = sshll.u32 %s385_s3, 4  ;;  %s328_s29 = smov [#allocation7]   ;;  %s154_s28 = int_to_ptr.hbm [resolvable:$true] %s153_s28 }
   0xe   :  { %75 = vmatpush.msra.mxu0 %v67_v0  ;;  %185 = vmatpush.msra.mxu1 %v67_v0  ;;  %v65_v2 = vld [vmem:[#allocation5 + $0x68] sm:$0xff]  ;;  %v64_v3 = vld [vmem:[#allocation5 + $0x60] sm:$0xff]  ;;  %v50_v4 = vld [vmem:[#allocation2] sm:$0xff]  ;;  %s151_s30 = sshll.u32 %s328_s29, 4  ;;  %s329_s3 = smov [#allocation8]   ;;  %s152_s30 = int_to_ptr.vmem [resolvable:$true] %s151_s30 }
   0xf   :  { %v63_v5 = vld [vmem:[#allocation5 + $0x58] sm:$0xff]  ;;  %v69_v6 = vmul.f32 %v50_v4, %v50_v4  ;;  %v62_v7 = vld [vmem:[#allocation5 + $0x50] sm:$0xff]  ;;  %v61_v8 = vld [vmem:[#allocation5 + $0x48] sm:$0xff]  ;;  %s164_s5 = sshll.u32 %s329_s3, 4  ;;  %s166_s8 = sshll.u32 %s386_s4, 4  ;;  %s165_s5 = int_to_ptr.vmem [resolvable:$true] %s164_s5  ;;  %s167_s8 = int_to_ptr.hbm [resolvable:$true] %s166_s8 }
  0x10   :  { %76 = vmatpush.msra.mxu0 %v66_v1  ;;  %186 = vmatpush.msra.mxu1 %v66_v1  ;;  %v51_v9 = vld [vmem:[#allocation2 + $0x8] sm:$0xff]  ;;  %v60_v10 = vld [vmem:[#allocation5 + $0x40] sm:$0xff]  ;;  %v58_v13 = vld [vmem:[#allocation5 + $0x30] sm:$0xff] }
  0x11   :  { %71 = vadd.xlane.f32.xlu0 %v69_v6  ;;  %v70_v11 = vmul.f32 %v51_v9, %v51_v9  ;;  %v59_v12 = vld [vmem:[#allocation5 + $0x38] sm:$0xff]  ;;  %v57_v14 = vld [vmem:[#allocation5 + $0x28] sm:$0xff]  ;;  %v56_v15 = vld [vmem:[#allocation5 + $0x20] sm:$0xff] }
  0x12   :  { %77 = vmatpush.msra.mxu0 %v65_v2  ;;  %187 = vmatpush.msra.mxu1 %v65_v2  ;;  %v55_v16 = vld [vmem:[#allocation5 + $0x18] sm:$0xff]  ;;  %v54_v17 = vld [vmem:[#allocation5 + $0x10] sm:$0xff]  ;;  %v53_v18 = vld [vmem:[#allocation5 + $0x8] sm:$0xff] }
  0x13   :  { %v52_v19 = vld [vmem:[#allocation5] sm:$0xff]  ;;  %v207_v21 = vld [vmem:[%s384_s2] ss:$0 sm:$0xff] }
  0x14   :  { %78 = vmatpush.msra.mxu0 %v64_v3  ;;  %188 = vmatpush.msra.mxu1 %v64_v3 }
  0x16   :  { %79 = vmatpush.msra.mxu0 %v63_v5  ;;  %189 = vmatpush.msra.mxu1 %v63_v5 }
  0x18   :  { %80 = vmatpush.msra.mxu0 %v62_v7  ;;  %190 = vmatpush.msra.mxu1 %v62_v7 }
  0x19   :  { %73 = vadd.xlane.f32.xlu0 %v70_v11 }
  0x1a   :  { %81 = vmatpush.msra.mxu0 %v61_v8  ;;  %191 = vmatpush.msra.mxu1 %v61_v8 }
  0x1c   :  { %82 = vmatpush.msra.mxu0 %v60_v10  ;;  %192 = vmatpush.msra.mxu1 %v60_v10 }
  0x1e   :  { %83 = vmatpush.msra.mxu0 %v59_v12  ;;  %193 = vmatpush.msra.mxu1 %v59_v12 }
  0x20   :  { %84 = vmatpush.msra.mxu0 %v58_v13  ;;  %194 = vmatpush.msra.mxu1 %v58_v13 }
  0x22   :  { %85 = vmatpush.msra.mxu0 %v57_v14  ;;  %195 = vmatpush.msra.mxu1 %v57_v14 }
  0x24   :  { %86 = vmatpush.msra.mxu0 %v56_v15  ;;  %196 = vmatpush.msra.mxu1 %v56_v15 }
  0x26   :  { %87 = vmatpush.msra.mxu0 %v55_v16  ;;  %197 = vmatpush.msra.mxu1 %v55_v16 }
  0x28   :  { %88 = vmatpush.msra.mxu0 %v54_v17  ;;  %198 = vmatpush.msra.mxu1 %v54_v17 }
  0x2a   :  { %89 = vmatpush.msra.mxu0 %v53_v18  ;;  %199 = vmatpush.msra.mxu1 %v53_v18 }
  0x2c   :  { %90 = vmatpush.msra.mxu0 %v52_v19  ;;  %200 = vmatpush.msra.mxu1 %v52_v19 }
  0x2d   :  { %91 = vmatmul.f32.vlgmr.msra.gmra.mxu0 %v50_v4  ;;  %94 = vmatmul.f32.vlgmr.msra.gmra.mxu1 %v51_v9 }
  0x84   :  { %v72_v20 = vpop.xlane.xlu0 %71 }
  0x85   :  { %v101_v23 = vadd.f32 %v207_v21, %v72_v20 }
  0x8c   :  { %v74_v22 = vpop.xlane.xlu0 %73 }
  0x8d   :  { %v102_v24 = vadd.f32 %v207_v21, %v74_v22 }
  0xaa   :  { %v92_v25 = vpop.f32.mrf.mxu0  ;;  %v95_v26 = vpop.f32.mrf.mxu1 }
  0xab   :  { %v103_v27 = vmul.f32 2.0, %v92_v25  ;;  %v104_v28 = vmul.f32 2.0, %v95_v26 }
  0xad   :  { %v105_v29 = vsub.f32 %v101_v23, %v103_v27  ;;  %v106_v30 = vsub.f32 %v102_v24, %v104_v28 }
  0xaf   :  { %v107_v31 = vmax.f32 %v105_v29, 0.0  ;;  %v108_v32 = vmax.f32 %v106_v30, 0.0 }
  0xb1   :  { %109 = vst [vmem:[#allocation7] sm:$0xff] %v107_v31  ;;  %v111_v33 = vsub.f32 0.0, %v107_v31  ;;  %v112_v35 = vsub.f32 0.0, %v108_v32  ;;  %v131_v45 = vmul.f32 0.1, %v107_v31 }
  0xb2   :  { %110 = vst [vmem:[#allocation7 + $0x8] sm:$0xff] %v108_v32  ;;  %v132_v48 = vmul.f32 0.1, %v108_v32 }
  0xb3   :  { %v113_v34 = vmul.f32 1000000.0, %v111_v33  ;;  %v114_v36 = vmul.f32 1000000.0, %v112_v35  ;;  %159 = dma.vmem_to_hbm [thread:$0]  %s152_s30, 256, %s154_s28, [#allocation4], %s325_s23, %s325_s23, %s326_s24  }
  0xb4   :  { %v133_v46 = vsub.f32 0.0, %v131_v45  ;;  %v134_v49 = vsub.f32 0.0, %v132_v48 }
  0xb5   :  { %115 = vmax.xlane.f32.xlu1 %v113_v34 }
  0xb6   :  { %v135_v47 = vmul.f32 1.442695, %v133_v46  ;;  %v137_v51 = vmul.f32 1.442695, %v134_v49 }
  0xbd   :  { %117 = vmax.xlane.f32.xlu1 %v114_v36 }
 0x128   :  { %v116_v37 = vpop.xlane.xlu1 %115 }
 0x129   :  { %v119_v38 = vsub.f32 %v113_v34, %v116_v37 }
 0x12b   :  { %v121_v39 = vmul.f32 1.442695, %v119_v38 }
 0x12d   :  { %208 = vpow2.f32 %v121_v39 }
 0x130   :  { %v118_v40 = vpop.xlane.xlu1 %117 }
 0x131   :  { %v120_v41 = vsub.f32 %v114_v36, %v118_v40 }
 0x133   :  { %v209_v42 = vpop.eup %208  ;;  %v123_v43 = vmul.f32 1.442695, %v120_v41 }
 0x134   :  { %125 = vadd.xlane.f32.xlu2 %v209_v42 }
 0x135   :  { %210 = vpow2.f32 %v123_v43 }
 0x136   :  { %212 = vpow2.f32 %v135_v47 }
 0x13b   :  { %v211_v44 = vpop.eup %210 }
 0x13c   :  { %127 = vadd.xlane.f32.xlu2 %v211_v44  ;;  %v213_v52 = vpop.eup %212 }
 0x13d   :  { %v139_v56 = vadd.f32 1e-08, %v213_v52 }
 0x1a7   :  { %v126_v50 = vpop.xlane.xlu2 %125 }
 0x1a8   :  { %214 = vrcp.f32 %v126_v50 }
 0x1a9   :  { %216 = vpow2.f32 %v137_v51 }
 0x1ae   :  { %v215_v53 = vpop.eup %214 }
 0x1af   :  { %v141_v54 = vmul.f32 %v215_v53, %v209_v42  ;;  %v128_v55 = vpop.xlane.xlu2 %127  ;;  %v217_v58 = vpop.eup %216 }
 0x1b0   :  { %218 = vrcp.f32 %v128_v55  ;;  %v140_v61 = vadd.f32 1e-08, %v217_v58 }
 0x1b1   :  { %v143_v57 = vmul.f32 %v141_v54, %v139_v56 }
 0x1b3   :  { %145 = vst [vmem:[#allocation8] sm:$0xff] %v143_v57 }
 0x1b6   :  { %v219_v59 = vpop.eup %218 }
 0x1b7   :  { %v142_v60 = vmul.f32 %v219_v59, %v211_v44 }
 0x1b9   :  { %v144_v62 = vmul.f32 %v142_v60, %v140_v61 }
 0x1bb   :  { %146 = vst [vmem:[#allocation8 + $0x8] sm:$0xff] %v144_v62 }
 0x1bc   :  { %172 = dma.vmem_to_hbm [thread:$0]  %s165_s5, 256, %s167_s8, [#allocation9], %s325_s23, %s325_s23, %s326_s24  }
 0x1bd   :  { %320 = dma.done.wait [#allocation4], 256  }
 0x1be   :  { %321 = vsyncadd [#allocation4], 4294967040 }
 0x1bf   :  { %322 = dma.done.wait [#allocation9], 256  }
 0x1c0   :  { %323 = vsyncadd [#allocation9], 4294967040 }
 0x1c1   :  { %181 = vsyncpa [#allocation3], 1 }
 0x1c2   :  { %182 = vsyncpa [#allocation6], 1 }
 0x1c3   :  { %183 = vsyncpa [#allocation4], 1 }
 0x1c4   :  { %184 = vsyncpa [#allocation9], 1 }

// kernel: tpu_custom_call.1
= control target key start
LH: loop header
LB: loop body
LE: loop exit
PB: predicated region body
PF: predicated region fallthrough
CT: control target
= control target key end

     0   :  { %10 = vsyncpa [#allocation3], 0  ;;  %s382_s0 = inlined_call_operand.hbm [shape: f32[16,128], index: 0, kind: input, shape index: {}]   ;;  %s383_s1 = inlined_call_operand.hbm [shape: f32[128,128], index: 1, kind: input, shape index: {}]   ;;  %s384_s2 = inlined_call_operand.vmem [shape: f32[1,128], index: 2, kind: input, shape index: {}]   ;;  %s385_s3 = inlined_call_operand.hbm [shape: f32[16,128], index: 3, kind: output, shape index: {0}]   ;;  %s386_s4 = inlined_call_operand.hbm [shape: f32[16,128], index: 4, kind: output, shape index: {1}]  }
   0x1   :  { %11 = vsyncpa [#allocation6], 0 }
   0x2   :  { %12 = vsyncpa [#allocation4], 0 }
   0x3   :  { %13 = vsyncpa [#allocation9], 0  ;;  %s18_s17 = sshll.u32 %s382_s0, 4  ;;  %s324_s18 = smov [#allocation2]   ;;  %s19_s17 = int_to_ptr.hbm [resolvable:$true] %s18_s17 }
   0x4   :  { %s20_s19 = sshll.u32 %s324_s18, 4  ;;  %s31_s22 = sshll.u32 %s383_s1, 4  ;;  %s21_s19 = int_to_ptr.vmem [resolvable:$true] %s20_s19  ;;  %s32_s22 = int_to_ptr.hbm [resolvable:$true] %s31_s22 }
   0x5   :  { %s325_s23 = smov 128   ;;  %s326_s24 = smov 8  }
   0x6   :  { %26 = dma.hbm_to_vmem [thread:$0]  %s19_s17, 256, %s21_s19, [#allocation3], %s325_s23, %s325_s23, %s326_s24  }
   0x7   :  { %s327_s25 = smov [#allocation5]  }
   0x8   :  { %s33_s26 = sshll.u32 %s327_s25, 4  ;;  %s34_s26 = int_to_ptr.vmem [resolvable:$true] %s33_s26 }
   0x9   :  { %39 = dma.hbm_to_vmem [thread:$0]  %s32_s22, 2048, %s34_s26, [#allocation6], %s325_s23, %s325_s23, %s326_s24  }
   0xa   :  { %316 = dma.done.wait [#allocation3], 256  }
   0xb   :  { %317 = vsyncadd [#allocation3], 4294967040 }
   0xc   :  { %318 = dma.done.wait [#allocation6], 2048  }
   0xd   :  { %319 = vsyncadd [#allocation6], 4294965248  ;;  %v67_v0 = vld [vmem:[#allocation5 + $0x78] sm:$0xff]  ;;  %v66_v1 = vld [vmem:[#allocation5 + $0x70] sm:$0xff]  ;;  %s153_s28 = sshll.u32 %s385_s3, 4  ;;  %s328_s29 = smov [#allocation7]   ;;  %s154_s28 = int_to_ptr.hbm [resolvable:$true] %s153_s28 }
   0xe   :  { %75 = vmatpush.msra.mxu0 %v67_v0  ;;  %185 = vmatpush.msra.mxu1 %v67_v0  ;;  %v65_v2 = vld [vmem:[#allocation5 + $0x68] sm:$0xff]  ;;  %v64_v3 = vld [vmem:[#allocation5 + $0x60] sm:$0xff]  ;;  %v50_v4 = vld [vmem:[#allocation2] sm:$0xff]  ;;  %s151_s30 = sshll.u32 %s328_s29, 4  ;;  %s329_s3 = smov [#allocation8]   ;;  %s152_s30 = int_to_ptr.vmem [resolvable:$true] %s151_s30 }
   0xf   :  { %v63_v5 = vld [vmem:[#allocation5 + $0x58] sm:$0xff]  ;;  %v69_v6 = vmul.f32 %v50_v4, %v50_v4  ;;  %v62_v7 = vld [vmem:[#allocation5 + $0x50] sm:$0xff]  ;;  %v61_v8 = vld [vmem:[#allocation5 + $0x48] sm:$0xff]  ;;  %s164_s5 = sshll.u32 %s329_s3, 4  ;;  %s166_s8 = sshll.u32 %s386_s4, 4  ;;  %s165_s5 = int_to_ptr.vmem [resolvable:$true] %s164_s5  ;;  %s167_s8 = int_to_ptr.hbm [resolvable:$true] %s166_s8 }
  0x10   :  { %76 = vmatpush.msra.mxu0 %v66_v1  ;;  %186 = vmatpush.msra.mxu1 %v66_v1  ;;  %v51_v9 = vld [vmem:[#allocation2 + $0x8] sm:$0xff]  ;;  %v60_v10 = vld [vmem:[#allocation5 + $0x40] sm:$0xff]  ;;  %v58_v13 = vld [vmem:[#allocation5 + $0x30] sm:$0xff] }
  0x11   :  { %71 = vadd.xlane.f32.xlu0 %v69_v6  ;;  %v70_v11 = vmul.f32 %v51_v9, %v51_v9  ;;  %v59_v12 = vld [vmem:[#allocation5 + $0x38] sm:$0xff]  ;;  %v57_v14 = vld [vmem:[#allocation5 + $0x28] sm:$0xff]  ;;  %v56_v15 = vld [vmem:[#allocation5 + $0x20] sm:$0xff] }
  0x12   :  { %77 = vmatpush.msra.mxu0 %v65_v2  ;;  %187 = vmatpush.msra.mxu1 %v65_v2  ;;  %v55_v16 = vld [vmem:[#allocation5 + $0x18] sm:$0xff]  ;;  %v54_v17 = vld [vmem:[#allocation5 + $0x10] sm:$0xff]  ;;  %v53_v18 = vld [vmem:[#allocation5 + $0x8] sm:$0xff] }
  0x13   :  { %v52_v19 = vld [vmem:[#allocation5] sm:$0xff]  ;;  %v207_v21 = vld [vmem:[%s384_s2] ss:$0 sm:$0xff] }
  0x14   :  { %78 = vmatpush.msra.mxu0 %v64_v3  ;;  %188 = vmatpush.msra.mxu1 %v64_v3 }
  0x16   :  { %79 = vmatpush.msra.mxu0 %v63_v5  ;;  %189 = vmatpush.msra.mxu1 %v63_v5 }
  0x18   :  { %80 = vmatpush.msra.mxu0 %v62_v7  ;;  %190 = vmatpush.msra.mxu1 %v62_v7 }
  0x19   :  { %73 = vadd.xlane.f32.xlu0 %v70_v11 }
  0x1a   :  { %81 = vmatpush.msra.mxu0 %v61_v8  ;;  %191 = vmatpush.msra.mxu1 %v61_v8 }
  0x1c   :  { %82 = vmatpush.msra.mxu0 %v60_v10  ;;  %192 = vmatpush.msra.mxu1 %v60_v10 }
  0x1e   :  { %83 = vmatpush.msra.mxu0 %v59_v12  ;;  %193 = vmatpush.msra.mxu1 %v59_v12 }
  0x20   :  { %84 = vmatpush.msra.mxu0 %v58_v13  ;;  %194 = vmatpush.msra.mxu1 %v58_v13 }
  0x22   :  { %85 = vmatpush.msra.mxu0 %v57_v14  ;;  %195 = vmatpush.msra.mxu1 %v57_v14 }
  0x24   :  { %86 = vmatpush.msra.mxu0 %v56_v15  ;;  %196 = vmatpush.msra.mxu1 %v56_v15 }
  0x26   :  { %87 = vmatpush.msra.mxu0 %v55_v16  ;;  %197 = vmatpush.msra.mxu1 %v55_v16 }
  0x28   :  { %88 = vmatpush.msra.mxu0 %v54_v17  ;;  %198 = vmatpush.msra.mxu1 %v54_v17 }
  0x2a   :  { %89 = vmatpush.msra.mxu0 %v53_v18  ;;  %199 = vmatpush.msra.mxu1 %v53_v18 }
  0x2c   :  { %90 = vmatpush.msra.mxu0 %v52_v19  ;;  %200 = vmatpush.msra.mxu1 %v52_v19 }
  0x2d   :  { %91 = vmatmul.f32.vlgmr.msra.gmra.mxu0 %v50_v4  ;;  %94 = vmatmul.f32.vlgmr.msra.gmra.mxu1 %v51_v9 }
  0x84   :  { %v72_v20 = vpop.xlane.xlu0 %71 }
  0x85   :  { %v101_v23 = vadd.f32 %v207_v21, %v72_v20 }
  0x8c   :  { %v74_v22 = vpop.xlane.xlu0 %73 }
  0x8d   :  { %v102_v24 = vadd.f32 %v207_v21, %v74_v22 }
  0xaa   :  { %v92_v25 = vpop.f32.mrf.mxu0  ;;  %v95_v26 = vpop.f32.mrf.mxu1 }
  0xab   :  { %v103_v27 = vmul.f32 2.0, %v92_v25  ;;  %v104_v28 = vmul.f32 2.0, %v95_v26 }
  0xad   :  { %v105_v29 = vsub.f32 %v101_v23, %v103_v27  ;;  %v106_v30 = vsub.f32 %v102_v24, %v104_v28 }
  0xaf   :  { %v107_v31 = vmax.f32 %v105_v29, 0.0  ;;  %v108_v32 = vmax.f32 %v106_v30, 0.0 }
  0xb1   :  { %109 = vst [vmem:[#allocation7] sm:$0xff] %v107_v31  ;;  %v111_v33 = vsub.f32 0.0, %v107_v31  ;;  %v112_v35 = vsub.f32 0.0, %v108_v32  ;;  %v131_v45 = vmul.f32 0.1, %v107_v31 }
  0xb2   :  { %110 = vst [vmem:[#allocation7 + $0x8] sm:$0xff] %v108_v32  ;;  %v132_v48 = vmul.f32 0.1, %v108_v32 }
  0xb3   :  { %v113_v34 = vmul.f32 1000000.0, %v111_v33  ;;  %v114_v36 = vmul.f32 1000000.0, %v112_v35  ;;  %159 = dma.vmem_to_hbm [thread:$0]  %s152_s30, 256, %s154_s28, [#allocation4], %s325_s23, %s325_s23, %s326_s24  }
  0xb4   :  { %v133_v46 = vsub.f32 0.0, %v131_v45  ;;  %v134_v49 = vsub.f32 0.0, %v132_v48 }
  0xb5   :  { %115 = vmax.xlane.f32.xlu1 %v113_v34 }
  0xb6   :  { %v135_v47 = vmul.f32 1.442695, %v133_v46  ;;  %v137_v51 = vmul.f32 1.442695, %v134_v49 }
  0xbd   :  { %117 = vmax.xlane.f32.xlu1 %v114_v36 }
 0x128   :  { %v116_v37 = vpop.xlane.xlu1 %115 }
 0x129   :  { %v119_v38 = vsub.f32 %v113_v34, %v116_v37 }
 0x12b   :  { %v121_v39 = vmul.f32 1.442695, %v119_v38 }
 0x12d   :  { %208 = vpow2.f32 %v121_v39 }
 0x130   :  { %v118_v40 = vpop.xlane.xlu1 %117 }
 0x131   :  { %v120_v41 = vsub.f32 %v114_v36, %v118_v40 }
 0x133   :  { %v209_v42 = vpop.eup %208  ;;  %v123_v43 = vmul.f32 1.442695, %v120_v41 }
 0x134   :  { %125 = vadd.xlane.f32.xlu2 %v209_v42 }
 0x135   :  { %210 = vpow2.f32 %v123_v43 }
 0x136   :  { %212 = vpow2.f32 %v135_v47 }
 0x13b   :  { %v211_v44 = vpop.eup %210 }
 0x13c   :  { %127 = vadd.xlane.f32.xlu2 %v211_v44  ;;  %v213_v52 = vpop.eup %212 }
 0x13d   :  { %v139_v56 = vadd.f32 1e-08, %v213_v52 }
 0x1a7   :  { %v126_v50 = vpop.xlane.xlu2 %125 }
 0x1a8   :  { %214 = vrcp.f32 %v126_v50 }
 0x1a9   :  { %216 = vpow2.f32 %v137_v51 }
 0x1ae   :  { %v215_v53 = vpop.eup %214 }
 0x1af   :  { %v141_v54 = vmul.f32 %v215_v53, %v209_v42  ;;  %v128_v55 = vpop.xlane.xlu2 %127  ;;  %v217_v58 = vpop.eup %216 }
 0x1b0   :  { %218 = vrcp.f32 %v128_v55  ;;  %v140_v61 = vadd.f32 1e-08, %v217_v58 }
 0x1b1   :  { %v143_v57 = vmul.f32 %v141_v54, %v139_v56 }
 0x1b3   :  { %145 = vst [vmem:[#allocation8] sm:$0xff] %v143_v57 }
 0x1b6   :  { %v219_v59 = vpop.eup %218 }
 0x1b7   :  { %v142_v60 = vmul.f32 %v219_v59, %v211_v44 }
 0x1b9   :  { %v144_v62 = vmul.f32 %v142_v60, %v140_v61 }
 0x1bb   :  { %146 = vst [vmem:[#allocation8 + $0x8] sm:$0xff] %v144_v62 }
 0x1bc   :  { %172 = dma.vmem_to_hbm [thread:$0]  %s165_s5, 256, %s167_s8, [#allocation9], %s325_s23, %s325_s23, %s326_s24  }
 0x1bd   :  { %320 = dma.done.wait [#allocation4], 256  }
 0x1be   :  { %321 = vsyncadd [#allocation4], 4294967040 }
 0x1bf   :  { %322 = dma.done.wait [#allocation9], 256  }
 0x1c0   :  { %323 = vsyncadd [#allocation9], 4294967040 }
 0x1c1   :  { %181 = vsyncpa [#allocation3], 1 }
 0x1c2   :  { %182 = vsyncpa [#allocation6], 1 }
 0x1c3   :  { %183 = vsyncpa [#allocation4], 1 }
 0x1c4   :  { %184 = vsyncpa [#allocation9], 1 }

</bundles_post_ra>
